<compile_context>
chip_gen: v7x
topology: tpu7x:2x2x1
jax: 0.10.0
libtpu: 0.0.40
codegen_flags: <defaults>
</compile_context>

<pallas_src>
import functools

import jax
import jax.numpy as jnp
from jax.experimental import pallas as pl
from jax.experimental.pallas import tpu as pltpu


def mlp_kernel(x_ref, w1_ref, b1_ref, w2_ref, b2_ref, o_ref):
    """Fused: out = relu(x @ W1 + b1) @ W2 + b2 for one batch tile (all f32)."""
    x = x_ref[...]                                              # (TB, in_dim) f32
    h = jnp.dot(x, w1_ref[...], preferred_element_type=jnp.float32)
    h = jnp.maximum(h + b1_ref[...], 0.0)                       # (TB, 128) f32
    out = jnp.dot(h, w2_ref[...], preferred_element_type=jnp.float32)
    o_ref[...] = (out + b2_ref[...]).astype(o_ref.dtype)        # (TB, out_dim)


def prepare_params(w1, b1, w2, b2):
    """One-time parameter prep (done at init, NOT per forward call)."""
    return (jnp.asarray(w1, jnp.float32),                # (in_dim, hidden)
            jnp.asarray(b1, jnp.float32).reshape(1, -1), # (1, hidden)
            jnp.asarray(w2, jnp.float32),                # (hidden, out_dim)
            jnp.asarray(b2, jnp.float32).reshape(1, -1)) # (1, out_dim)


def _pick_batch_tile(B, block_b):
    """Batch tile: full batch when small; otherwise >=2 steps (v7x megacore),
    multiple of 16 rows, capped at block_b."""
    if B <= 1024:
        return B                       # block dim == full array dim -> legal
    half = ((pl.cdiv(B, 2) + 15) // 16) * 16
    return min(block_b, half)


@functools.partial(jax.jit, static_argnames=("block_b",))
def network_forward(x, w1, b1_2d, w2, b2_2d, *, block_b=8192):
    """x: (B, in_dim) f32; returns (B, out_dim) f32.

    Params must already be prepared via prepare_params().
    """
    B, in_dim = x.shape
    hidden = w1.shape[1]
    out_dim = w2.shape[1]

    tb = _pick_batch_tile(B, block_b)
    nb = pl.cdiv(B, tb)

    return pl.pallas_call(
        mlp_kernel,
        out_shape=jax.ShapeDtypeStruct((B, out_dim), jnp.float32),
        grid_spec=pltpu.PrefetchScalarGridSpec(
            num_scalar_prefetch=0,
            grid=(nb,),
            in_specs=[
                pl.BlockSpec((tb, in_dim), lambda i: (i, 0)),       # x tile
                pl.BlockSpec((in_dim, hidden), lambda i: (0, 0)),   # W1 resident
                pl.BlockSpec((1, hidden), lambda i: (0, 0)),        # b1 resident
                pl.BlockSpec((hidden, out_dim), lambda i: (0, 0)),  # W2 resident
                pl.BlockSpec((1, out_dim), lambda i: (0, 0)),       # b2 resident
            ],
            out_specs=pl.BlockSpec((tb, out_dim), lambda i: (i, 0)),
        ),
        compiler_params=pltpu.CompilerParams(
            dimension_semantics=("parallel",),         # shard batch on v7x 2 TCs
            vmem_limit_bytes=48 * 1024 * 1024,         # fits v5e/v6e/v7x budgets
        ),
    )(x, w1, b1_2d, w2, b2_2d)


def init_params(key, in_dim, hidden, out_dim):
    """Deterministic init mirroring nn.Linear's default (uniform +/- 1/sqrt(fan_in))."""
    k1, k2, k3, k4 = jax.random.split(key, 4)
    bound1 = 1.0 / jnp.sqrt(in_dim)
    bound2 = 1.0 / jnp.sqrt(hidden)
    # Stored as (in_features, out_features) so the kernel computes x @ W + b,
    # equivalent to PyTorch's x @ W.T with W of shape (out_features, in_features).
    w1 = jax.random.uniform(k1, (in_dim, hidden), jnp.float32, -bound1, bound1)
    b1 = jax.random.uniform(k2, (hidden,), jnp.float32, -bound1, bound1)
    w2 = jax.random.uniform(k3, (hidden, out_dim), jnp.float32, -bound2, bound2)
    b2 = jax.random.uniform(k4, (out_dim,), jnp.float32, -bound2, bound2)
    return w1, b1, w2, b2


if __name__ == "__main__":
    in_dim, hidden, out_dim = 8, 128, 4   # e.g. 8-dim observation, 4 discrete actions
    batch = 2

    key = jax.random.PRNGKey(0)
    kx, kp = jax.random.split(key)
    x = jax.random.normal(kx, (batch, in_dim), jnp.float32)
    w1, b1, w2, b2 = init_params(kp, in_dim, hidden, out_dim)

    params = prepare_params(w1, b1, w2, b2)   # one-time, outside the hot path
    out = network_forward(x, *params)
    jax.block_until_ready(out)
    assert out.shape == (batch, out_dim)

    # Full-f32 reference; tolerance covers possible MXU f32 pass decomposition.
    ref = jnp.maximum(x @ w1 + b1, 0.0) @ w2 + b2
    assert jnp.allclose(out, ref, atol=1e-2, rtol=1e-2)

    print("KERNEL_OK")
</pallas_src>

<mosaic_0001>
module attributes {stable_mosaic.version = 11 : i64} {
  func.func @mlp_kernel(%arg0: i32, %arg1: memref<2x8xf32, #tpu.memory_space<vmem>>, %arg2: memref<8x128xf32, #tpu.memory_space<vmem>>, %arg3: memref<1x128xf32, #tpu.memory_space<vmem>>, %arg4: memref<128x4xf32, #tpu.memory_space<vmem>>, %arg5: memref<1x4xf32, #tpu.memory_space<vmem>>, %arg6: memref<2x4xf32, #tpu.memory_space<vmem>>) attributes {dimension_semantics = [#tpu.dimension_semantics<parallel>], iteration_bounds = array<i64: 1>, scalar_prefetch = 0 : i64, scratch_operands = 0 : i64, tpu.core_type = #tpu.core_type<tc>, window_params = [{transform_indices = @transform_0, window_bounds = array<i64: 2, 8>}, {pipeline_mode = #tpu.pipeline_mode<synchronous>, transform_indices = @transform_1, window_bounds = array<i64: 8, 128>}, {pipeline_mode = #tpu.pipeline_mode<synchronous>, transform_indices = @transform_2, window_bounds = array<i64: 1, 128>}, {pipeline_mode = #tpu.pipeline_mode<synchronous>, transform_indices = @transform_3, window_bounds = array<i64: 128, 4>}, {pipeline_mode = #tpu.pipeline_mode<synchronous>, transform_indices = @transform_4, window_bounds = array<i64: 1, 4>}, {transform_indices = @transform_5, window_bounds = array<i64: 2, 4>}]} {
    %c0 = arith.constant 0 : index
    %c0_0 = arith.constant 0 : index
    %0 = vector.load %arg1[%c0, %c0_0] : memref<2x8xf32, #tpu.memory_space<vmem>>, vector<2x8xf32>
    %c0_1 = arith.constant 0 : index
    %c0_2 = arith.constant 0 : index
    %1 = vector.load %arg2[%c0_1, %c0_2] : memref<8x128xf32, #tpu.memory_space<vmem>>, vector<8x128xf32>
    %cst = arith.constant dense<0.000000e+00> : vector<2x128xf32>
    %2 = tpu.matmul %0, %1, %cst {dimension_numbers = #tpu.dot_dimension_numbers<[1], [0], [0], [1], [0, 0, 1, 1], [], []>} : vector<2x8xf32>, vector<8x128xf32>, vector<2x128xf32> -> vector<2x128xf32>
    %c0_3 = arith.constant 0 : index
    %c0_4 = arith.constant 0 : index
    %3 = vector.load %arg3[%c0_3, %c0_4] : memref<1x128xf32, #tpu.memory_space<vmem>>, vector<1x128xf32>
    %4 = vector.broadcast %3 : vector<1x128xf32> to vector<2x128xf32>
    %5 = arith.addf %2, %4 : vector<2x128xf32>
    %cst_5 = arith.constant 0.000000e+00 : f32
    %6 = vector.broadcast %cst_5 : f32 to vector<2x128xf32>
    %7 = arith.maximumf %5, %6 : vector<2x128xf32>
    %c0_6 = arith.constant 0 : index
    %c0_7 = arith.constant 0 : index
    %8 = vector.load %arg4[%c0_6, %c0_7] : memref<128x4xf32, #tpu.memory_space<vmem>>, vector<128x4xf32>
    %cst_8 = arith.constant dense<0.000000e+00> : vector<2x4xf32>
    %9 = tpu.matmul %7, %8, %cst_8 {dimension_numbers = #tpu.dot_dimension_numbers<[1], [0], [0], [1], [0, 0, 1, 1], [], []>} : vector<2x128xf32>, vector<128x4xf32>, vector<2x4xf32> -> vector<2x4xf32>
    %c0_9 = arith.constant 0 : index
    %c0_10 = arith.constant 0 : index
    %10 = vector.load %arg5[%c0_9, %c0_10] : memref<1x4xf32, #tpu.memory_space<vmem>>, vector<1x4xf32>
    %11 = vector.broadcast %10 : vector<1x4xf32> to vector<2x4xf32>
    %12 = arith.addf %9, %11 : vector<2x4xf32>
    %c0_11 = arith.constant 0 : index
    %c0_12 = arith.constant 0 : index
    %13 = vector.load %arg6[%c0_11, %c0_12] : memref<2x4xf32, #tpu.memory_space<vmem>>, vector<2x4xf32>
    tpu.vector_store %arg6[%c0_11, %c0_12], %12 {strides = array<i32>} : memref<2x4xf32, #tpu.memory_space<vmem>>, vector<2x4xf32>,
    return
  }
  func.func @transform_0(%arg0: i32) -> (i32, i32) {
    %c0_i32 = arith.constant 0 : i32
    %c0_i32_0 = arith.constant 0 : i32
    return %arg0, %c0_i32 : i32, i32
  }
  func.func @transform_1(%arg0: i32) -> (i32, i32) {
    %c0_i32 = arith.constant 0 : i32
    %c0_i32_0 = arith.constant 0 : i32
    %c0_i32_1 = arith.constant 0 : i32
    return %c0_i32, %c0_i32_0 : i32, i32
  }
  func.func @transform_2(%arg0: i32) -> (i32, i32) {
    %c0_i32 = arith.constant 0 : i32
    %c0_i32_0 = arith.constant 0 : i32
    %c0_i32_1 = arith.constant 0 : i32
    return %c0_i32, %c0_i32_0 : i32, i32
  }
  func.func @transform_3(%arg0: i32) -> (i32, i32) {
    %c0_i32 = arith.constant 0 : i32
    %c0_i32_0 = arith.constant 0 : i32
    %c0_i32_1 = arith.constant 0 : i32
    return %c0_i32, %c0_i32_0 : i32, i32
  }
  func.func @transform_4(%arg0: i32) -> (i32, i32) {
    %c0_i32 = arith.constant 0 : i32
    %c0_i32_0 = arith.constant 0 : i32
    %c0_i32_1 = arith.constant 0 : i32
    return %c0_i32, %c0_i32_0 : i32, i32
  }
  func.func @transform_5(%arg0: i32) -> (i32, i32) {
    %c0_i32 = arith.constant 0 : i32
    %c0_i32_0 = arith.constant 0 : i32
    return %arg0, %c0_i32 : i32, i32
  }
}

</mosaic_0001>

<bundles_post_ra>
// kernel: network_forward.1
= control target key start
LH: loop header
LB: loop body
LE: loop exit
PB: predicated region body
PF: predicated region fallthrough
CT: control target
= control target key end

     0   :  { %vm30_vm0 = vcmask 64512   ;;  %v328_v2 = vmov 0.0   ;;  %vm329_vm1 = vmmov 0   ;;  %v330_v6 = vmov 0.0|0.0   ;;  %s434_s0 = inlined_call_operand.vmem [shape: f32[2,8], index: 0, kind: input, shape index: {}]   ;;  %s435_s1 = inlined_call_operand.vmem [shape: f32[8,128], index: 1, kind: input, shape index: {}]   ;;  %s436_s2 = inlined_call_operand.vmem [shape: f32[1,128], index: 2, kind: input, shape index: {}]   ;;  %s437_s3 = inlined_call_operand.vmem [shape: f32[128,4], index: 3, kind: input, shape index: {}]   ;;  %s438_s4 = inlined_call_operand.vmem [shape: f32[1,4], index: 4, kind: input, shape index: {}]   ;;  %s439_s5 = inlined_call_operand.hbm [shape: f32[2,4], index: 5, kind: output, shape index: {}]  }
   0x1   :  { %v22_v0 = vld [vmem:[%s435_s1] sm:$0xff]  ;;  %236 = vmatprep.subr.mxu0 %v328_v2  ;;  %238 = vmatprep.mubr.msk.f32.mxu0 %vm329_vm1, %v328_v2  ;;  %v106_v4 = vld [vmem:[%s437_s3 + $0x8] sm:$0xff]  ;;  %v107_v5 = vld [vmem:[%s437_s3 + $0x10] sm:$0xff] }
   0x2   :  { %v21_v1 = vld [vmem:[%s434_s0] sm:$0x3]  ;;  %237 = vmatpush3.msra.mxu0 %v22_v0  ;;  %276 = vmatprep.subr.bf16.mxu1 %v330_v6  ;;  %v108_v8 = vld [vmem:[%s437_s3 + $0x18] sm:$0xff]  ;;  %v110_v11 = vld [vmem:[%s437_s3 + $0x28] sm:$0xff] }
   0x3   :  { %v105_v3 = vld [vmem:[%s437_s3] sm:$0xff]  ;;  %239 = vmatmul.mubr.msk.f32.vlgmr.msra.gmra.mrb[0].mxu0 %vm30_vm0, %v21_v1  ;;  %273 = vmatprep.mubr.msk.f32.mxu1 %vm329_vm1, %v328_v2  ;;  %v280_v9 = vpack.c.bf16 %v108_v8, %v107_v5 }
   0x4   :  { %v277_v7 = vpack.c.bf16 %v106_v4, %v105_v3  ;;  %v109_v10 = vld [vmem:[%s437_s3 + $0x20] sm:$0xff] }
   0x6   :  { %278 = vmatpush3.bf16.msra.mxu1 %v277_v7 }
   0x7   :  { %279 = vmatprep.subr.bf16.mxu1 %v330_v6 }
   0x8   :  { %10 = vsyncpa [#allocation3], 0  ;;  %v283_v12 = vpack.c.bf16 %v110_v11, %v109_v10  ;;  %v111_v13 = vld [vmem:[%s437_s3 + $0x30] sm:$0xff]  ;;  %v112_v14 = vld [vmem:[%s437_s3 + $0x38] sm:$0xff]  ;;  %s331_s29 = smov [#allocation2]   ;;  %vm198_vm2 = vcmask 25600  }
   0x9   :  { %v286_v15 = vpack.c.bf16 %v112_v14, %v111_v13  ;;  %v113_v16 = vld [vmem:[%s437_s3 + $0x40] sm:$0xff]  ;;  %v114_v17 = vld [vmem:[%s437_s3 + $0x48] sm:$0xff]  ;;  %v115_v19 = vld [vmem:[%s437_s3 + $0x50] sm:$0xff]  ;;  %s206_s30 = sshll.u32 %s331_s29, 4  ;;  %s207_s30 = int_to_ptr.vmem [resolvable:$true] %s206_s30 }
   0xa   :  { %281 = vmatpush3.bf16.msra.mxu1 %v280_v9  ;;  %v289_v18 = vpack.c.bf16 %v114_v17, %v113_v16  ;;  %v116_v20 = vld [vmem:[%s437_s3 + $0x58] sm:$0xff]  ;;  %v117_v22 = vld [vmem:[%s437_s3 + $0x60] sm:$0xff]  ;;  %v118_v23 = vld [vmem:[%s437_s3 + $0x68] sm:$0xff]  ;;  %p309_p1 = scmp.lt.s32.totalorder %s207_s30, %s207_s30 }
   0xb   :  { %282 = vmatprep.subr.bf16.mxu1 %v330_v6  ;;  %v292_v21 = vpack.c.bf16 %v116_v20, %v115_v19  ;;  %v295_v24 = vpack.c.bf16 %v118_v23, %v117_v22  ;;  %v119_v25 = vld [vmem:[%s437_s3 + $0x70] sm:$0xff]  ;;  %v120_v26 = vld [vmem:[%s437_s3 + $0x78] sm:$0xff]  ;;  %v214_v28 = vld [vmem:[%s436_s2] ss:$0 sm:$0xff]  ;;  %s304_s3 = scalar_lea.vmem %s207_s30, 32 }
   0xc   :  { %v298_v27 = vpack.c.bf16 %v120_v26, %v119_v25  ;;  %v216_v33 = vld [vmem:[%s438_s4] ss:$0 sm:$0xff]  ;;  %p305_p0 = scmp.ne.s32.totalorder %s207_s30, %s304_s3  ;;  %p310_p2 = scmp.lt.s32.totalorder %s304_s3, %s304_s3 }
   0xe   :  { %284 = vmatpush3.bf16.msra.mxu1 %v283_v12  ;;  %p311_p3 = por %p310_p2, %p309_p1 }
   0xf   :  { %285 = vmatprep.subr.bf16.mxu1 %v330_v6 }
  0x10   :  { %p312_p4 = pnand %p311_p3, %p305_p0 }
  0x12   :  { %287 = vmatpush3.bf16.msra.mxu1 %v286_v15 }
  0x13   :  { %288 = vmatprep.subr.bf16.mxu1 %v330_v6 }
  0x16   :  { %290 = vmatpush3.bf16.msra.mxu1 %v289_v18 }
  0x17   :  { %291 = vmatprep.subr.bf16.mxu1 %v330_v6 }
  0x1a   :  { %293 = vmatpush3.bf16.msra.mxu1 %v292_v21 }
  0x1b   :  { %294 = vmatprep.subr.bf16.mxu1 %v330_v6 }
  0x1e   :  { %296 = vmatpush3.bf16.msra.mxu1 %v295_v24 }
  0x1f   :  { %297 = vmatprep.subr.bf16.mxu1 %v330_v6 }
  0x22   :  { %299 = vmatpush3.bf16.msra.mxu1 %v298_v27 }
  0xd6   :  { %v100_v29 = vpop.f32.mrb[0].mxu0 }
  0xd7   :  { %v101_v30 = vadd.f32 %v214_v28, %v100_v29  ;;  %v240_v31 = vpop.f32.mrb[1].mxu0 }
  0xd9   :  { %v104_v32 = vmax.f32 %v101_v30, 0.0 }
  0xdb   :  { %274 = vmatmul.mubr.f32.vlgmr.msra.gmra.mrb[0].mxu1 %v104_v32 }
 0x1ae   :  { %v194_v34 = vpop.f32.mrb[0].mxu1 }
 0x1af   :  { %v195_v35 = vadd.f32 %v216_v33, %v194_v34  ;;  %v275_v36 = vpop.f32.mrb[1].mxu1 }
 0x1b1   :  { %199 = vst.msk [vmem:[#allocation2] sm:$0x3] %vm198_vm2, %v195_v35 }
 0x1b2   :  { %315 = shalt.err (!%p312_p4)
}
 0x1b3   :  { %s316_s7 = scalar_lea.hbm %s439_s5, 32 }
 0x1b4   :  { %p317_p5 = scmp.ne.s32.totalorder %s439_s5, %s316_s7  ;;  %p320_p6 = scmp.lt.u32.totalorder %s316_s7, %s439_s5 }
 0x1b6   :  { %p322_p7 = pnand %p320_p6, %p317_p5 }
 0x1b8   :  { %325 = shalt.err (!%p322_p7)
}
 0x1b9   :  { %209 = dma.vmem_to_hbm [thread:$0]  %s207_s30, 32, %s439_s5, [#allocation3]  }
 0x1ba   :  { %326 = dma.done.wait [#allocation3], 32  }
 0x1bb   :  { %327 = vsyncadd [#allocation3], 4294967264 }
 0x1bc   :  { %213 = vsyncpa [#allocation3], 1 }

</bundles_post_ra>
